<compile_context>
chip_gen: v7x
topology: tpu7x:2x2x1
jax: 0.10.0
libtpu: 0.0.40
codegen_flags: <defaults>
</compile_context>

<pallas_src>
import functools

import jax
import jax.numpy as jnp
from jax.experimental import pallas as pl
from jax.experimental.pallas import tpu as pltpu

BN_EPS = 1e-5
LANE = 128
SUBLANE = 8


def _round_up(n, m):
    return ((n + m - 1) // m) * m


def mlp_kernel(x_ref, w1_ref, gamma_ref, beta_ref, w2_ref, b2_ref,
               o_ref, acc_ref, *, batch_size):
    """One grid step handles a 128-wide tile of the hidden dimension."""
    k = pl.program_id(0)

    @pl.when(k == 0)
    def _():
        acc_ref[...] = jnp.zeros_like(acc_ref)

    x = x_ref[...]                                                   # [Bp, Dp]
    # Linear 1 (no bias) -> MXU, f32 accumulation.
    h = jnp.dot(x, w1_ref[...], preferred_element_type=jnp.float32)  # [Bp, TH]

    # BatchNorm1d (training mode, biased variance). Padded batch rows of x are
    # zero and Linear1 has no bias, so they contribute 0 to the sums; divide by
    # the real batch size.
    inv_b = jnp.float32(1.0 / batch_size)
    mean = jnp.sum(h, axis=0, keepdims=True) * inv_b                 # [1, TH]
    sumsq = jnp.sum(h * h, axis=0, keepdims=True) * inv_b            # [1, TH]
    var = sumsq - mean * mean
    scale = gamma_ref[...] * jax.lax.rsqrt(var + BN_EPS)             # [1, TH]
    shift = beta_ref[...] - mean * scale                             # [1, TH]

    # Fused BN + ReLU: one multiply-add + max per element of [Bp, TH].
    h_act = jnp.maximum(h * scale + shift, 0.0)

    # Linear 2 partial product for this hidden tile, accumulated across tiles.
    acc_ref[...] += jnp.dot(h_act, w2_ref[...],
                            preferred_element_type=jnp.float32)

    @pl.when(k == pl.num_programs(0) - 1)
    def _():
        o_ref[...] = (acc_ref[...] + b2_ref[...]).astype(o_ref.dtype)


def mlp_forward(x, w1_t, gamma, beta, w2_t, b2, *, hidden_tile=LANE):
    """x:[B,Din], w1_t:[Din,H], gamma/beta:[1,H], w2_t:[H,O], b2:[1,O]."""
    B, D_in = x.shape
    H = w1_t.shape[1]
    O = w2_t.shape[1]

    # Lane-pad last dims to 128, sublane-pad batch to 8 -> dense vregs,
    # unmasked stores, full MXU tiles.
    Bp = _round_up(B, SUBLANE)
    Dp = _round_up(D_in, LANE)
    Hp = _round_up(H, max(hidden_tile, LANE))
    Op = _round_up(O, LANE)

    f32 = jnp.float32
    xp = jnp.pad(x.astype(f32), ((0, Bp - B), (0, Dp - D_in)))
    w1p = jnp.pad(w1_t.astype(f32), ((0, Dp - D_in), (0, Hp - H)))
    w2p = jnp.pad(w2_t.astype(f32), ((0, Hp - H), (0, Op - O)))
    gp = jnp.pad(gamma.astype(f32), ((0, 0), (0, Hp - H)))
    bp = jnp.pad(beta.astype(f32), ((0, 0), (0, Hp - H)))
    b2p = jnp.pad(b2.astype(f32), ((0, 0), (0, Op - O)))

    n_h_tiles = Hp // hidden_tile
    kernel = functools.partial(mlp_kernel, batch_size=B)

    out_padded = pl.pallas_call(
        kernel,
        out_shape=jax.ShapeDtypeStruct((Bp, Op), x.dtype),
        grid_spec=pltpu.PrefetchScalarGridSpec(
            num_scalar_prefetch=0,
            grid=(n_h_tiles,),
            in_specs=[
                pl.BlockSpec((Bp, Dp), lambda k: (0, 0)),            # x (VMEM-resident)
                pl.BlockSpec((Dp, hidden_tile), lambda k: (0, k)),   # w1 hidden tile
                pl.BlockSpec((1, hidden_tile), lambda k: (0, k)),    # gamma tile
                pl.BlockSpec((1, hidden_tile), lambda k: (0, k)),    # beta tile
                pl.BlockSpec((hidden_tile, Op), lambda k: (k, 0)),   # w2 hidden tile
                pl.BlockSpec((1, Op), lambda k: (0, 0)),             # b2 (resident)
            ],
            out_specs=pl.BlockSpec((Bp, Op), lambda k: (0, 0)),      # accumulator output
            scratch_shapes=[pltpu.VMEM((Bp, Op), jnp.float32)],
        ),
        compiler_params=pltpu.CompilerParams(
            # Hidden-tile axis carries the Linear-2 accumulator -> arbitrary.
            dimension_semantics=("arbitrary",),
        ),
    )(xp, w1p, gp, bp, w2p, b2p)

    return out_padded[:B, :O]


def reference_forward(x, w1_t, gamma, beta, w2_t, b2):
    h = x.astype(jnp.float32) @ w1_t.astype(jnp.float32)
    mean = jnp.mean(h, axis=0, keepdims=True)
    var = jnp.mean((h - mean) ** 2, axis=0, keepdims=True)
    h = (h - mean) * jax.lax.rsqrt(var + BN_EPS) * gamma + beta
    h = jnp.maximum(h, 0.0)
    return h @ w2_t.astype(jnp.float32) + b2


if __name__ == "__main__":
    # Small shapes consistent with MLP(input_dim, hidden_size, output_dim).
    B, D_IN, HIDDEN, D_OUT = 8, 32, 64, 16

    key = jax.random.PRNGKey(0)
    k_x, k_w1, k_w2, k_b2 = jax.random.split(key, 4)

    x = jax.random.normal(k_x, (B, D_IN), dtype=jnp.float32)

    # Deterministic PyTorch-like uniform init.
    bound1 = 1.0 / (D_IN ** 0.5)
    w1 = jax.random.uniform(k_w1, (HIDDEN, D_IN), jnp.float32, -bound1, bound1)
    bound2 = 1.0 / (HIDDEN ** 0.5)
    w2 = jax.random.uniform(k_w2, (D_OUT, HIDDEN), jnp.float32, -bound2, bound2)
    b2 = jax.random.uniform(k_b2, (1, D_OUT), jnp.float32, -bound2, bound2)

    gamma = jnp.ones((1, HIDDEN), jnp.float32)   # BatchNorm weight init
    beta = jnp.zeros((1, HIDDEN), jnp.float32)   # BatchNorm bias init

    # Pre-transpose linear weights so kernel computes activations @ weights.
    w1_t = w1.T  # [D_IN, HIDDEN]
    w2_t = w2.T  # [HIDDEN, D_OUT]

    out = jax.block_until_ready(mlp_forward(x, w1_t, gamma, beta, w2_t, b2))
    ref = reference_forward(x, w1_t, gamma, beta, w2_t, b2)

    assert out.shape == (B, D_OUT)
    assert jnp.allclose(out, ref, atol=1e-4, rtol=1e-4), float(
        jnp.max(jnp.abs(out - ref)))

    print("KERNEL_OK")
</pallas_src>

<mosaic_0001>
module attributes {stable_mosaic.version = 11 : i64} {
  func.func @mlp_kernel(%arg0: i32, %arg1: memref<8x128xf32, #tpu.memory_space<vmem>>, %arg2: memref<128x128xf32, #tpu.memory_space<vmem>>, %arg3: memref<1x128xf32, #tpu.memory_space<vmem>>, %arg4: memref<1x128xf32, #tpu.memory_space<vmem>>, %arg5: memref<128x128xf32, #tpu.memory_space<vmem>>, %arg6: memref<1x128xf32, #tpu.memory_space<vmem>>, %arg7: memref<8x128xf32, #tpu.memory_space<vmem>>, %arg8: memref<8x128xf32, #tpu.memory_space<vmem>>) attributes {dimension_semantics = [#tpu.dimension_semantics<arbitrary>], iteration_bounds = array<i64: 1>, scalar_prefetch = 0 : i64, scratch_operands = 1 : i64, tpu.core_type = #tpu.core_type<tc>, window_params = [{pipeline_mode = #tpu.pipeline_mode<synchronous>, transform_indices = @transform_0, window_bounds = array<i64: 8, 128>}, {transform_indices = @transform_1, window_bounds = array<i64: 128, 128>}, {transform_indices = @transform_2, window_bounds = array<i64: 1, 128>}, {transform_indices = @transform_3, window_bounds = array<i64: 1, 128>}, {transform_indices = @transform_4, window_bounds = array<i64: 128, 128>}, {pipeline_mode = #tpu.pipeline_mode<synchronous>, transform_indices = @transform_5, window_bounds = array<i64: 1, 128>}, {pipeline_mode = #tpu.pipeline_mode<synchronous>, transform_indices = @transform_6, window_bounds = array<i64: 8, 128>}]} {
    %c0_i32 = arith.constant 0 : i32
    %0 = arith.cmpi eq, %arg0, %c0_i32 : i32
    %1 = arith.extui %0 : i1 to i32
    %c0_i32_0 = arith.constant 0 : i32
    %2 = arith.cmpi ne, %1, %c0_i32_0 : i32
    scf.if %2 {
      %cst_23 = arith.constant 0.000000e+00 : f32
      %39 = vector.broadcast %cst_23 : f32 to vector<8x128xf32>
      %c0_24 = arith.constant 0 : index
      %c0_25 = arith.constant 0 : index
      %40 = vector.load %arg8[%c0_24, %c0_25] : memref<8x128xf32, #tpu.memory_space<vmem>>, vector<8x128xf32>
      tpu.vector_store %arg8[%c0_24, %c0_25], %39 {strides = array<i32>} : memref<8x128xf32, #tpu.memory_space<vmem>>, vector<8x128xf32>,
    } else {
    }
    %c0 = arith.constant 0 : index
    %c0_1 = arith.constant 0 : index
    %3 = vector.load %arg1[%c0, %c0_1] : memref<8x128xf32, #tpu.memory_space<vmem>>, vector<8x128xf32>
    %c0_2 = arith.constant 0 : index
    %c0_3 = arith.constant 0 : index
    %4 = vector.load %arg2[%c0_2, %c0_3] : memref<128x128xf32, #tpu.memory_space<vmem>>, vector<128x128xf32>
    %cst = arith.constant dense<0.000000e+00> : vector<8x128xf32>
    %5 = tpu.matmul %3, %4, %cst {dimension_numbers = #tpu.dot_dimension_numbers<[1], [0], [0], [1], [0, 0, 1, 1], [], []>} : vector<8x128xf32>, vector<128x128xf32>, vector<8x128xf32> -> vector<8x128xf32>
    %cst_4 = arith.constant dense<0.000000e+00> : vector<128xf32>
    %6 = vector.multi_reduction <add>, %5, %cst_4 [0] : vector<8x128xf32> to vector<128xf32>
    %7 = vector.shape_cast %6 : vector<128xf32> to vector<1x128xf32>
    %cst_5 = arith.constant 1.250000e-01 : f32
    %8 = vector.broadcast %cst_5 : f32 to vector<1x128xf32>
    %9 = arith.mulf %7, %8 : vector<1x128xf32>
    %10 = arith.mulf %5, %5 : vector<8x128xf32>
    %cst_6 = arith.constant dense<0.000000e+00> : vector<128xf32>
    %11 = vector.multi_reduction <add>, %10, %cst_6 [0] : vector<8x128xf32> to vector<128xf32>
    %12 = vector.shape_cast %11 : vector<128xf32> to vector<1x128xf32>
    %cst_7 = arith.constant 1.250000e-01 : f32
    %13 = vector.broadcast %cst_7 : f32 to vector<1x128xf32>
    %14 = arith.mulf %12, %13 : vector<1x128xf32>
    %15 = arith.mulf %9, %9 : vector<1x128xf32>
    %16 = arith.subf %14, %15 : vector<1x128xf32>
    %c0_8 = arith.constant 0 : index
    %c0_9 = arith.constant 0 : index
    %17 = vector.load %arg3[%c0_8, %c0_9] : memref<1x128xf32, #tpu.memory_space<vmem>>, vector<1x128xf32>
    %cst_10 = arith.constant 9.99999974E-6 : f32
    %18 = vector.broadcast %cst_10 : f32 to vector<1x128xf32>
    %19 = arith.addf %16, %18 : vector<1x128xf32>
    %20 = math.rsqrt %19 : vector<1x128xf32>
    %21 = arith.mulf %17, %20 : vector<1x128xf32>
    %c0_11 = arith.constant 0 : index
    %c0_12 = arith.constant 0 : index
    %22 = vector.load %arg4[%c0_11, %c0_12] : memref<1x128xf32, #tpu.memory_space<vmem>>, vector<1x128xf32>
    %23 = arith.mulf %9, %21 : vector<1x128xf32>
    %24 = arith.subf %22, %23 : vector<1x128xf32>
    %25 = vector.broadcast %21 : vector<1x128xf32> to vector<8x128xf32>
    %26 = arith.mulf %5, %25 : vector<8x128xf32>
    %27 = vector.broadcast %24 : vector<1x128xf32> to vector<8x128xf32>
    %28 = arith.addf %26, %27 : vector<8x128xf32>
    %cst_13 = arith.constant 0.000000e+00 : f32
    %29 = vector.broadcast %cst_13 : f32 to vector<8x128xf32>
    %30 = arith.maximumf %28, %29 : vector<8x128xf32>
    %c0_14 = arith.constant 0 : index
    %c0_15 = arith.constant 0 : index
    %31 = vector.load %arg8[%c0_14, %c0_15] : memref<8x128xf32, #tpu.memory_space<vmem>>, vector<8x128xf32>
    %c0_16 = arith.constant 0 : index
    %c0_17 = arith.constant 0 : index
    %32 = vector.load %arg5[%c0_16, %c0_17] : memref<128x128xf32, #tpu.memory_space<vmem>>, vector<128x128xf32>
    %cst_18 = arith.constant dense<0.000000e+00> : vector<8x128xf32>
    %33 = tpu.matmul %30, %32, %cst_18 {dimension_numbers = #tpu.dot_dimension_numbers<[1], [0], [0], [1], [0, 0, 1, 1], [], []>} : vector<8x128xf32>, vector<128x128xf32>, vector<8x128xf32> -> vector<8x128xf32>
    %34 = arith.addf %31, %33 : vector<8x128xf32>
    %c0_19 = arith.constant 0 : index
    %c0_20 = arith.constant 0 : index
    %35 = vector.load %arg8[%c0_19, %c0_20] : memref<8x128xf32, #tpu.memory_space<vmem>>, vector<8x128xf32>
    tpu.vector_store %arg8[%c0_19, %c0_20], %34 {strides = array<i32>} : memref<8x128xf32, #tpu.memory_space<vmem>>, vector<8x128xf32>,
    %c0_i32_21 = arith.constant 0 : i32
    %36 = arith.cmpi eq, %arg0, %c0_i32_21 : i32
    %37 = arith.extui %36 : i1 to i32
    %c0_i32_22 = arith.constant 0 : i32
    %38 = arith.cmpi ne, %37, %c0_i32_22 : i32
    scf.if %38 {
      %c0_23 = arith.constant 0 : index
      %c0_24 = arith.constant 0 : index
      %39 = vector.load %arg8[%c0_23, %c0_24] : memref<8x128xf32, #tpu.memory_space<vmem>>, vector<8x128xf32>
      %c0_25 = arith.constant 0 : index
      %c0_26 = arith.constant 0 : index
      %40 = vector.load %arg6[%c0_25, %c0_26] : memref<1x128xf32, #tpu.memory_space<vmem>>, vector<1x128xf32>
      %41 = vector.broadcast %40 : vector<1x128xf32> to vector<8x128xf32>
      %42 = arith.addf %39, %41 : vector<8x128xf32>
      %c0_27 = arith.constant 0 : index
      %c0_28 = arith.constant 0 : index
      %43 = vector.load %arg7[%c0_27, %c0_28] : memref<8x128xf32, #tpu.memory_space<vmem>>, vector<8x128xf32>
      tpu.vector_store %arg7[%c0_27, %c0_28], %42 {strides = array<i32>} : memref<8x128xf32, #tpu.memory_space<vmem>>, vector<8x128xf32>,
    } else {
    }
    return
  }
  func.func @transform_0(%arg0: i32) -> (i32, i32) {
    %c0_i32 = arith.constant 0 : i32
    %c0_i32_0 = arith.constant 0 : i32
    %c0_i32_1 = arith.constant 0 : i32
    return %c0_i32, %c0_i32_0 : i32, i32
  }
  func.func @transform_1(%arg0: i32) -> (i32, i32) {
    %c0_i32 = arith.constant 0 : i32
    %c0_i32_0 = arith.constant 0 : i32
    return %c0_i32, %arg0 : i32, i32
  }
  func.func @transform_2(%arg0: i32) -> (i32, i32) {
    %c0_i32 = arith.constant 0 : i32
    %c0_i32_0 = arith.constant 0 : i32
    return %c0_i32, %arg0 : i32, i32
  }
  func.func @transform_3(%arg0: i32) -> (i32, i32) {
    %c0_i32 = arith.constant 0 : i32
    %c0_i32_0 = arith.constant 0 : i32
    return %c0_i32, %arg0 : i32, i32
  }
  func.func @transform_4(%arg0: i32) -> (i32, i32) {
    %c0_i32 = arith.constant 0 : i32
    %c0_i32_0 = arith.constant 0 : i32
    return %arg0, %c0_i32 : i32, i32
  }
  func.func @transform_5(%arg0: i32) -> (i32, i32) {
    %c0_i32 = arith.constant 0 : i32
    %c0_i32_0 = arith.constant 0 : i32
    %c0_i32_1 = arith.constant 0 : i32
    return %c0_i32, %c0_i32_0 : i32, i32
  }
  func.func @transform_6(%arg0: i32) -> (i32, i32) {
    %c0_i32 = arith.constant 0 : i32
    %c0_i32_0 = arith.constant 0 : i32
    %c0_i32_1 = arith.constant 0 : i32
    return %c0_i32, %c0_i32_0 : i32, i32
  }
}

</mosaic_0001>

<bundles_post_ra>
// kernel: tpu_custom_call.1
= control target key start
LH: loop header
LB: loop body
LE: loop exit
PB: predicated region body
PF: predicated region fallthrough
CT: control target
= control target key end

     0   :  { %11 = vsyncpa [#allocation4], 0  ;;  %s693_s0 = inlined_call_operand.hbm [shape: f32[8,128], index: 0, kind: input, shape index: {}]   ;;  %s694_s1 = inlined_call_operand.hbm [shape: f32[128,128], index: 1, kind: input, shape index: {}]   ;;  %s695_s2 = inlined_call_operand.vmem [shape: f32[1,128], index: 2, kind: input, shape index: {}]   ;;  %s696_s3 = inlined_call_operand.vmem [shape: f32[1,128], index: 3, kind: input, shape index: {}]   ;;  %s697_s4 = inlined_call_operand.hbm [shape: f32[128,128], index: 4, kind: input, shape index: {}]   ;;  %s698_s5 = inlined_call_operand.vmem [shape: f32[1,128], index: 5, kind: input, shape index: {}]   ;;  %s699_s6 = inlined_call_operand.hbm [shape: f32[8,128], index: 6, kind: output, shape index: {}]  }
   0x1   :  { %12 = vsyncpa [#allocation7], 0 }
   0x2   :  { %13 = vsyncpa [#allocation5], 0  ;;  %s570_s21 = smov [#allocation6]   ;;  %s476_s25 = scalar_lea.hbm %s694_s1, 2048 }
   0x3   :  { %s29_s22 = sshll.u32 %s570_s21, 4  ;;  %p477_p0 = scmp.ne.s32.totalorder %s694_s1, %s476_s25  ;;  %s30_s22 = int_to_ptr.vmem [resolvable:$true] %s29_s22 }
   0x4   :  { %p480_p1 = scmp.lt.u32.totalorder %s476_s25, %s694_s1 }
   0x6   :  { %p482_p2 = pnand %p480_p1, %p477_p0 }
   0x8   :  { %485 = shalt.err (!%p482_p2)
}
   0x9   :  { %s486_s30 = scalar_lea.vmem %s30_s22, 2048  ;;  %p491_p4 = scmp.lt.s32.totalorder %s30_s22, %s30_s22 }
   0xa   :  { %p487_p3 = scmp.ne.s32.totalorder %s30_s22, %s486_s30  ;;  %p492_p5 = scmp.lt.s32.totalorder %s486_s30, %s486_s30 }
   0xc   :  { %p493_p6 = por %p492_p5, %p491_p4 }
   0xe   :  { %p494_p7 = pnand %p493_p6, %p487_p3 }
  0x10   :  { %497 = shalt.err (!%p494_p7)
}
  0x11   :  { %s571_s7 = smov 128   ;;  %s572_s8 = smov 8  }
  0x12   :  { %35 = dma.hbm_to_vmem [thread:$0]  %s694_s1, 2048, %s30_s22, [#allocation7], %s571_s7, %s571_s7, %s572_s8  }
  0x13   :  { %s573_s11 = smov [#allocation3]   ;;  %s574_s13 = smov [#allocation8]  }
  0x14   :  { %s20_s12 = sshll.u32 %s573_s11, 4  ;;  %s45_s14 = sshll.u32 %s574_s13, 4  ;;  %s21_s12 = int_to_ptr.vmem [resolvable:$true] %s20_s12  ;;  %s46_s14 = int_to_ptr.vmem [resolvable:$true] %s45_s14 }
  0x15   :  { %s498_s17 = scalar_lea.hbm %s693_s0, 128 }
  0x16   :  { %p499_p8 = scmp.ne.s32.totalorder %s693_s0, %s498_s17  ;;  %p502_p9 = scmp.lt.u32.totalorder %s498_s17, %s693_s0 }
  0x18   :  { %p504_p10 = pnand %p502_p9, %p499_p8 }
  0x1a   :  { %507 = shalt.err (!%p504_p10)
}
  0x1b   :  { %s508_s1 = scalar_lea.vmem %s21_s12, 128  ;;  %p513_p12 = scmp.lt.s32.totalorder %s21_s12, %s21_s12 }
  0x1c   :  { %p509_p11 = scmp.ne.s32.totalorder %s21_s12, %s508_s1  ;;  %p514_p13 = scmp.lt.s32.totalorder %s508_s1, %s508_s1 }
  0x1e   :  { %p515_p0 = por %p514_p13, %p513_p12 }
  0x20   :  { %p516_p1 = pnand %p515_p0, %p509_p11 }
  0x22   :  { %519 = shalt.err (!%p516_p1)
}
  0x23   :  { %23 = dma.hbm_to_vmem [thread:$0]  %s693_s0, 128, %s21_s12, [#allocation4]  }
  0x24   :  { %s520_s26 = scalar_lea.hbm %s697_s4, 2048 }
  0x25   :  { %p521_p2 = scmp.ne.s32.totalorder %s697_s4, %s520_s26  ;;  %p524_p3 = scmp.lt.u32.totalorder %s520_s26, %s697_s4 }
  0x27   :  { %p526_p4 = pnand %p524_p3, %p521_p2 }
  0x29   :  { %529 = shalt.err (!%p526_p4)
}
  0x2a   :  { %s530_s9 = scalar_lea.vmem %s46_s14, 2048  ;;  %p535_p6 = scmp.lt.s32.totalorder %s46_s14, %s46_s14 }
  0x2b   :  { %p531_p5 = scmp.ne.s32.totalorder %s46_s14, %s530_s9  ;;  %p536_p7 = scmp.lt.s32.totalorder %s530_s9, %s530_s9 }
  0x2d   :  { %p537_p8 = por %p536_p7, %p535_p6 }
  0x2f   :  { %p538_p9 = pnand %p537_p8, %p531_p5 }
  0x31   :  { %541 = shalt.err (!%p538_p9)
}
  0x32   :  { %51 = dma.hbm_to_vmem [thread:$0]  %s697_s4, 2048, %s46_s14, [#allocation7], %s571_s7, %s571_s7, %s572_s8  }
  0x33   :  { %564 = dma.done.wait [#allocation4], 128  }
  0x34   :  { %565 = vsyncadd [#allocation4], 4294967168 }
  0x35   :  { %566 = dma.done.wait [#allocation7], 4096  }
  0x36   :  { %567 = vsyncadd [#allocation7], 4294963200  ;;  %v575_v0 = vmov 0.0|0.0   ;;  %vm576_vm0 = vmmov 0   ;;  %v577_v1 = vmov 0.0   ;;  %v69_v2 = vld [vmem:[#allocation6] sm:$0xff] }
  0x37   :  { %417 = vmatprep.subr.bf16.mxu0 %v575_v0  ;;  %379 = vmatprep.mubr.msk.f32.mxu0 %vm576_vm0, %v577_v1  ;;  %v70_v3 = vld [vmem:[#allocation6 + $0x8] sm:$0xff]  ;;  %v71_v4 = vld [vmem:[#allocation6 + $0x10] sm:$0xff]  ;;  %v72_v6 = vld [vmem:[#allocation6 + $0x18] sm:$0xff] }
  0x38   :  { %441 = vmatprep.subr.bf16.mxu1 %v575_v0  ;;  %414 = vmatprep.mubr.msk.f32.mxu1 %vm576_vm0, %v577_v1  ;;  %v418_v5 = vpack.c.bf16 %v70_v3, %v69_v2  ;;  %v421_v7 = vpack.c.bf16 %v72_v6, %v71_v4  ;;  %v73_v8 = vld [vmem:[#allocation6 + $0x20] sm:$0xff]  ;;  %v74_v9 = vld [vmem:[#allocation6 + $0x28] sm:$0xff]  ;;  %v75_v11 = vld [vmem:[#allocation6 + $0x30] sm:$0xff] }
  0x39   :  { %v424_v10 = vpack.c.bf16 %v74_v9, %v73_v8  ;;  %v76_v12 = vld [vmem:[#allocation6 + $0x38] sm:$0xff]  ;;  %v77_v14 = vld [vmem:[#allocation6 + $0x40] sm:$0xff]  ;;  %v78_v15 = vld [vmem:[#allocation6 + $0x48] sm:$0xff] }
  0x3a   :  { %419 = vmatpush3.bf16.msra.mxu0 %v418_v5  ;;  %v427_v13 = vpack.c.bf16 %v76_v12, %v75_v11  ;;  %v430_v16 = vpack.c.bf16 %v78_v15, %v77_v14  ;;  %v79_v17 = vld [vmem:[#allocation6 + $0x50] sm:$0xff]  ;;  %v80_v18 = vld [vmem:[#allocation6 + $0x58] sm:$0xff]  ;;  %v81_v20 = vld [vmem:[#allocation6 + $0x60] sm:$0xff] }
  0x3b   :  { %420 = vmatprep.subr.bf16.mxu0 %v575_v0  ;;  %v433_v19 = vpack.c.bf16 %v80_v18, %v79_v17  ;;  %v82_v21 = vld [vmem:[#allocation6 + $0x68] sm:$0xff]  ;;  %v83_v23 = vld [vmem:[#allocation6 + $0x70] sm:$0xff]  ;;  %v84_v24 = vld [vmem:[#allocation6 + $0x78] sm:$0xff] }
  0x3c   :  { %v436_v22 = vpack.c.bf16 %v82_v21, %v81_v20  ;;  %v439_v25 = vpack.c.bf16 %v84_v24, %v83_v23  ;;  %v68_v26 = vld [vmem:[#allocation3] sm:$0xff]  ;;  %v195_v27 = vld [vmem:[#allocation8] sm:$0xff]  ;;  %v196_v28 = vld [vmem:[#allocation8 + $0x8] sm:$0xff] }
  0x3d   :  { %v442_v29 = vpack.c.bf16 %v196_v28, %v195_v27  ;;  %v197_v30 = vld [vmem:[#allocation8 + $0x10] sm:$0xff]  ;;  %v198_v31 = vld [vmem:[#allocation8 + $0x18] sm:$0xff]  ;;  %v199_v33 = vld [vmem:[#allocation8 + $0x20] sm:$0xff] }
  0x3e   :  { %422 = vmatpush3.bf16.msra.mxu0 %v421_v7  ;;  %v445_v32 = vpack.c.bf16 %v198_v31, %v197_v30  ;;  %v200_v34 = vld [vmem:[#allocation8 + $0x28] sm:$0xff]  ;;  %v201_v36 = vld [vmem:[#allocation8 + $0x30] sm:$0xff]  ;;  %v202_v37 = vld [vmem:[#allocation8 + $0x38] sm:$0xff]  ;;  %v180_v7 = vlaneseq }
  0x3f   :  { %423 = vmatprep.subr.bf16.mxu0 %v575_v0  ;;  %443 = vmatpush3.bf16.msra.mxu1 %v442_v29  ;;  %v448_v35 = vpack.c.bf16 %v200_v34, %v199_v33  ;;  %v451_v38 = vpack.c.bf16 %v202_v37, %v201_v36  ;;  %v203_v39 = vld [vmem:[#allocation8 + $0x40] sm:$0xff]  ;;  %v204_v40 = vld [vmem:[#allocation8 + $0x48] sm:$0xff]  ;;  %v205_v42 = vld [vmem:[#allocation8 + $0x50] sm:$0xff] }
  0x40   :  { %444 = vmatprep.subr.bf16.mxu1 %v575_v0  ;;  %v454_v41 = vpack.c.bf16 %v204_v40, %v203_v39  ;;  %v206_v43 = vld [vmem:[#allocation8 + $0x58] sm:$0xff]  ;;  %v207_v45 = vld [vmem:[#allocation8 + $0x60] sm:$0xff]  ;;  %v208_v46 = vld [vmem:[#allocation8 + $0x68] sm:$0xff]  ;;  %v181_v8 = vshrl.u32 %v180_v7, 7 }
  0x41   :  { %v457_v44 = vpack.c.bf16 %v206_v43, %v205_v42  ;;  %v460_v47 = vpack.c.bf16 %v208_v46, %v207_v45  ;;  %v209_v48 = vld [vmem:[#allocation8 + $0x70] sm:$0xff]  ;;  %v210_v49 = vld [vmem:[#allocation8 + $0x78] sm:$0xff] }
  0x42   :  { %425 = vmatpush3.bf16.msra.mxu0 %v424_v10  ;;  %v463_v50 = vpack.c.bf16 %v210_v49, %v209_v48  ;;  %v172_v9 = vld [vmem:[%s695_s2] sm:$0x1]  ;;  %v182_v10 = vsub.s32 0, %v181_v8  ;;  %s578_s2 = smov [#allocation9]  }
  0x43   :  { %426 = vmatprep.subr.bf16.mxu0 %v575_v0  ;;  %446 = vmatpush3.bf16.msra.mxu1 %v445_v32  ;;  %v312_v21 = vld [vmem:[%s698_s5] ss:$0 sm:$0xff]  ;;  %s302_s14 = sshll.u32 %s578_s2, 4  ;;  %s303_s14 = int_to_ptr.vmem [resolvable:$true] %s302_s14 }
  0x44   :  { %447 = vmatprep.subr.bf16.mxu1 %v575_v0  ;;  %p547_p11 = scmp.lt.s32.totalorder %s303_s14, %s303_s14 }
  0x46   :  { %428 = vmatpush3.bf16.msra.mxu0 %v427_v13  ;;  %v176_v13 = vld [vmem:[%s696_s3] sm:$0x1]  ;;  %s542_s3 = scalar_lea.vmem %s303_s14, 128 }
  0x47   :  { %429 = vmatprep.subr.bf16.mxu0 %v575_v0  ;;  %449 = vmatpush3.bf16.msra.mxu1 %v448_v35  ;;  %p543_p10 = scmp.ne.s32.totalorder %s303_s14, %s542_s3  ;;  %p548_p12 = scmp.lt.s32.totalorder %s542_s3, %s542_s3 }
  0x48   :  { %450 = vmatprep.subr.bf16.mxu1 %v575_v0 }
  0x49   :  { %p549_p13 = por %p548_p12, %p547_p11 }
  0x4a   :  { %431 = vmatpush3.bf16.msra.mxu0 %v430_v16 }
  0x4b   :  { %432 = vmatprep.subr.bf16.mxu0 %v575_v0  ;;  %452 = vmatpush3.bf16.msra.mxu1 %v451_v38  ;;  %p550_p0 = pnand %p549_p13, %p543_p10 }
  0x4c   :  { %453 = vmatprep.subr.bf16.mxu1 %v575_v0 }
  0x4e   :  { %434 = vmatpush3.bf16.msra.mxu0 %v433_v19 }
  0x4f   :  { %435 = vmatprep.subr.bf16.mxu0 %v575_v0  ;;  %455 = vmatpush3.bf16.msra.mxu1 %v454_v41 }
  0x50   :  { %456 = vmatprep.subr.bf16.mxu1 %v575_v0 }
  0x52   :  { %437 = vmatpush3.bf16.msra.mxu0 %v436_v22 }
  0x53   :  { %438 = vmatprep.subr.bf16.mxu0 %v575_v0  ;;  %458 = vmatpush3.bf16.msra.mxu1 %v457_v44 }
  0x54   :  { %459 = vmatprep.subr.bf16.mxu1 %v575_v0 }
  0x56   :  { %440 = vmatpush3.bf16.msra.mxu0 %v439_v25 }
  0x57   :  { %461 = vmatpush3.bf16.msra.mxu1 %v460_v47 }
  0x58   :  { %462 = vmatprep.subr.bf16.mxu1 %v575_v0 }
  0x59   :  { %380 = vmatmul.mubr.f32.vlgmr.msra.gmra.mrb[0].mxu0 %v68_v26 }
  0x5b   :  { %464 = vmatpush3.bf16.msra.mxu1 %v463_v50 }
 0x12c   :  { %v151_v51 = vpop.f32.mrb[0].mxu0 }
 0x12d   :  { %v155_v52 = vrot.slane %v151_v51, 4  ;;  %v162_v53 = vmul.f32 %v151_v51, %v151_v51  ;;  %v381_v54 = vpop.f32.mrb[1].mxu0 }
 0x12f   :  { %v156_v55 = vadd.f32 %v155_v52, %v151_v51  ;;  %v163_v56 = vrot.slane %v162_v53, 4 }
 0x131   :  { %v157_v57 = vrot.slane %v156_v55, 2  ;;  %v164_v58 = vadd.f32 %v163_v56, %v162_v53 }
 0x133   :  { %v158_v59 = vadd.f32 %v157_v57, %v156_v55  ;;  %v165_v60 = vrot.slane %v164_v58, 2 }
 0x135   :  { %v159_v61 = vrot.slane %v158_v59, 1  ;;  %v166_v62 = vadd.f32 %v165_v60, %v164_v58 }
 0x137   :  { %v160_v63 = vadd.f32 %v159_v61, %v158_v59  ;;  %v167_v1 = vrot.slane %v166_v62, 1 }
 0x139   :  { %v161_v2 = vmul.f32 0.125, %v160_v63  ;;  %v168_v3 = vadd.f32 %v167_v1, %v166_v62 }
 0x13b   :  { %v169_v4 = vmul.f32 0.125, %v168_v3  ;;  %v170_v5 = vmul.f32 %v161_v2, %v161_v2 }
 0x13d   :  { %v171_v0 = vsub.f32 %v169_v4, %v170_v5 }
 0x13f   :  { %v173_v6 = vadd.f32 1e-05, %v171_v0 }
 0x141   :  { %474 = vrsqrt.f32 %v173_v6 }
 0x14b   :  { %v475_v11 = vpop.eup %474 }
 0x14c   :  { %v175_v12 = vmul.f32 %v475_v11, %v172_v9 }
 0x14e   :  { %v183_v14 = vrot.slane %v175_v12, %v182_v10  ;;  %v177_v15 = vmul.f32 %v175_v12, %v161_v2 }
 0x150   :  { %v178_v16 = vsub.f32 %v176_v13, %v177_v15  ;;  %v185_v17 = vmul.f32 %v183_v14, %v151_v51 }
 0x152   :  { %v190_v18 = vrot.slane %v178_v16, %v182_v10 }
 0x154   :  { %v192_v19 = vadd.f32 %v190_v18, %v185_v17 }
 0x156   :  { %v193_v20 = vmax.f32 %v192_v19, 0.0 }
 0x158   :  { %415 = vmatmul.mubr.f32.vlgmr.msra.gmra.mrb[0].mxu1 %v193_v20 }
 0x22b   :  { %v277_v22 = vpop.f32.mrb[0].mxu1 }
 0x22c   :  { %v294_v23 = vadd.f32 %v312_v21, %v277_v22  ;;  %v416_v24 = vpop.f32.mrb[1].mxu1 }
 0x22e   :  { %295 = vst [vmem:[#allocation9] sm:$0xff] %v294_v23 }
 0x22f   :  { %553 = shalt.err (!%p550_p0)
}
 0x230   :  { %s554_s17 = scalar_lea.hbm %s699_s6, 128 }
 0x231   :  { %p555_p1 = scmp.ne.s32.totalorder %s699_s6, %s554_s17  ;;  %p558_p2 = scmp.lt.u32.totalorder %s554_s17, %s699_s6 }
 0x233   :  { %p560_p3 = pnand %p558_p2, %p555_p1 }
 0x235   :  { %563 = shalt.err (!%p560_p3)
}
 0x236   :  { %305 = dma.vmem_to_hbm [thread:$0]  %s303_s14, 128, %s699_s6, [#allocation5]  }
 0x237   :  { %568 = dma.done.wait [#allocation5], 128  }
 0x238   :  { %569 = vsyncadd [#allocation5], 4294967168 }
 0x239   :  { %309 = vsyncpa [#allocation4], 1 }
 0x23a   :  { %310 = vsyncpa [#allocation7], 1 }
 0x23b   :  { %311 = vsyncpa [#allocation5], 1 }

</bundles_post_ra>
